<compile_context>
chip_gen: v5e
topology: v5e:2x2
jax: 0.10.0
libtpu: 0.0.40
codegen_flags: <defaults>
</compile_context>

<pallas_src>
import math

import jax
import jax.numpy as jnp
from jax import lax
from jax.experimental import pallas as pl
from jax.experimental.pallas import tpu as pltpu


# ----------------------------------------------------------------------------
# Tile selection: big, lane-dense blocks that fit the VMEM budget everywhere.
# ----------------------------------------------------------------------------
_TILE_BUDGET_BYTES = 4 * 1024 * 1024  # per-buffer cap; in+out double-buffered
                                      # => ~16 MiB total, fits v7x/v6e/v5e.


def _pick_tiles(B, C, itemsize=4):
    # Class tile: full class dim when modest (lane-dense, unmasked stores, no
    # per-tile class bookkeeping); otherwise largest <=2048 multiple of 128
    # that divides C.
    if C <= 2048 or C % 128 != 0:
        tc = C
    else:
        tc = 128
        for cand in range(2048, 0, -128):
            if C % cand == 0:
                tc = cand
                break

    # Row tile: largest divisor of B under the budget that satisfies the
    # (8, 128) sublane rule (multiple of 8, or the full extent).
    max_tb = max(1, _TILE_BUDGET_BYTES // (tc * itemsize))
    tb = B
    for cand in range(min(B, max_tb), 0, -1):
        if B % cand == 0 and (cand % 8 == 0 or cand == B):
            tb = cand
            break

    # Keep >=2 grid blocks when cheaply possible so v7x's 2 TensorCores both
    # get work (harmless on single-TC v5e/v6e).
    if (B // tb) * (C // tc) == 1 and tb % 16 == 0:
        tb //= 2
    return tb, tc


# ----------------------------------------------------------------------------
# Kernel
# ----------------------------------------------------------------------------
def _make_arcface_kernel(scale, cos_m, sin_m, theta, sinmm, tc):
    # Fold the final `* scale` into the branch constants so the selected value
    # is written directly (no extra full-tile multiply at the end).
    cos_m_s = cos_m * scale
    sin_m_s = sin_m * scale
    sinmm_s = sinmm * scale

    def kernel(labels_ref, logits_ref, out_ref):
        j = pl.program_id(1)                       # class-tile index
        x = logits_ref[...]                        # (tb, tc) fp32
        lab = labels_ref[...]                      # (tb, 1)  int32
        tb_, tc_ = x.shape

        # Compare the local lane index against the label shifted into this
        # tile's frame (saves a full-tile vector add vs. shifting the iota).
        col = lax.broadcasted_iota(jnp.int32, (tb_, tc_), 1)
        lab_local = lab - j * tc                   # (tb, 1)
        is_target = (col == lab_local) & (lab != -1)

        xs = x * scale                             # scaled pass-through value
        # NOTE: mirrors PyTorch exactly — no clamp before sqrt, so a target
        # logit with |t| >= 1 produces NaN, same as the reference module.
        sin_theta = jnp.sqrt(1.0 - x * x)
        cos_theta_m_s = x * cos_m_s - sin_theta * sin_m_s
        target_s = jnp.where(x > theta, cos_theta_m_s, xs - sinmm_s)

        out_ref[...] = jnp.where(is_target, target_s, xs)

    return kernel


def arcface_forward(logits, labels, s=64.0, margin=0.5, tb=None, tc=None):
    """logits: [B, C] float32, labels: [B] int32 (-1 => skip row)."""
    B, C = logits.shape
    itemsize = jnp.dtype(logits.dtype).itemsize
    if tb is None or tc is None:
        auto_tb, auto_tc = _pick_tiles(B, C, itemsize)
        tb = tb or auto_tb
        tc = tc or auto_tc
    assert B % tb == 0 and C % tc == 0, "tiling requires divisible shapes"

    cos_m = math.cos(margin)
    sin_m = math.sin(margin)
    theta = math.cos(math.pi - margin)
    sinmm = math.sin(math.pi - margin) * margin

    labels2d = labels.reshape(B, 1).astype(jnp.int32)
    kernel = _make_arcface_kernel(s, cos_m, sin_m, theta, sinmm, tc)

    # Memory-bound streaming op: tell XLA's scheduler so it overlaps neighbors.
    cost = pl.CostEstimate(
        flops=6 * B * C,
        transcendentals=B * C,                       # sqrt per element
        bytes_accessed=2 * B * C * itemsize + B * 4,  # read + write + labels
    )

    return pl.pallas_call(
        kernel,
        out_shape=jax.ShapeDtypeStruct((B, C), logits.dtype),
        grid_spec=pltpu.PrefetchScalarGridSpec(
            num_scalar_prefetch=0,
            grid=(B // tb, C // tc),
            in_specs=[
                # Labels column: index_map constant over the inner class axis,
                # so the tiny block is fetched once per row tile, not per step.
                pl.BlockSpec((tb, 1), lambda i, j: (i, 0)),
                # Logits tile: large, lane-dense slab.
                pl.BlockSpec((tb, tc), lambda i, j: (i, j)),
            ],
            out_specs=pl.BlockSpec((tb, tc), lambda i, j: (i, j)),
        ),
        # The PyTorch op is in-place on `logits`: alias input 1 -> output 0 so
        # no extra B*C HBM output allocation / copy is needed when the caller
        # lets the input die.
        input_output_aliases={1: 0},
        cost_estimate=cost,
        compiler_params=pltpu.CompilerParams(
            dimension_semantics=("parallel", "parallel"),
            # Raise the scoped VMEM limit (v5e default is 16 MiB) so the large
            # double-buffered tiles fit on every generation (<= 64 MiB on v7x).
            vmem_limit_bytes=32 * 1024 * 1024,
        ),
    )(labels2d, logits)


# ----------------------------------------------------------------------------
# Pure-JAX reference (mirrors the PyTorch forward, easy_margin=False)
# ----------------------------------------------------------------------------
def arcface_reference(logits, labels, s=64.0, margin=0.5):
    cos_m = math.cos(margin)
    sin_m = math.sin(margin)
    theta = math.cos(math.pi - margin)
    sinmm = math.sin(math.pi - margin) * margin
    B, C = logits.shape
    col = jnp.arange(C)[None, :]
    is_target = (col == labels[:, None]) & (labels[:, None] != -1)
    t = logits
    sin_theta = jnp.sqrt(1.0 - t * t)
    ctm = t * cos_m - sin_theta * sin_m
    final = jnp.where(t > theta, ctm, t - sinmm)
    return jnp.where(is_target, final, logits) * s


if __name__ == "__main__":
    key = jax.random.PRNGKey(0)
    B, C = 16, 256  # small synthetic shapes: 16 samples, 256 classes

    k1, k2 = jax.random.split(key)
    # Cosine-similarity-like logits in (-1, 1).
    logits = jnp.tanh(jax.random.normal(k1, (B, C), dtype=jnp.float32))
    labels = jax.random.randint(k2, (B,), 0, C, dtype=jnp.int32)
    # A couple of "ignore" rows (label == -1), as the module supports.
    labels = labels.at[3].set(-1).at[11].set(-1)

    # Compute the reference before the kernel call (the kernel aliases the
    # logits buffer to its output).
    ref = arcface_reference(logits, labels)

    out = arcface_forward(logits, labels)
    out = jax.block_until_ready(out)

    assert out.shape == (B, C) and out.dtype == jnp.float32
    assert jnp.allclose(out, ref, atol=1e-4, rtol=1e-4)
    print("KERNEL_OK")
</pallas_src>

<mosaic_0001>
module attributes {stable_mosaic.version = 11 : i64} {
  func.func @kernel(%arg0: i32, %arg1: i32, %arg2: memref<8x1xi32, #tpu.memory_space<vmem>>, %arg3: memref<8x256xf32, #tpu.memory_space<vmem>>, %arg4: memref<8x256xf32, #tpu.memory_space<vmem>>) attributes {dimension_semantics = [#tpu.dimension_semantics<parallel>, #tpu.dimension_semantics<parallel>], iteration_bounds = array<i64: 2, 1>, scalar_prefetch = 0 : i64, scratch_operands = 0 : i64, tpu.core_type = #tpu.core_type<tc>, window_params = [{transform_indices = @transform_0, window_bounds = array<i64: 8, 1>}, {transform_indices = @transform_1, window_bounds = array<i64: 8, 256>}, {transform_indices = @transform_2, window_bounds = array<i64: 8, 256>}]} {
    %c0 = arith.constant 0 : index
    %c0_0 = arith.constant 0 : index
    %0 = vector.load %arg3[%c0, %c0_0] : memref<8x256xf32, #tpu.memory_space<vmem>>, vector<8x256xf32>
    %c0_1 = arith.constant 0 : index
    %c0_2 = arith.constant 0 : index
    %1 = vector.load %arg2[%c0_1, %c0_2] : memref<8x1xi32, #tpu.memory_space<vmem>>, vector<8x1xi32>
    %2 = tpu.iota {dimensions = array<i32: 1>} : vector<8x256xi32>
    %c256_i32 = arith.constant 256 : i32
    %3 = arith.muli %arg1, %c256_i32 : i32
    %4 = vector.broadcast %3 : i32 to vector<8x1xi32>
    %5 = arith.subi %1, %4 : vector<8x1xi32>
    %6 = vector.broadcast %5 : vector<8x1xi32> to vector<8x256xi32>
    %7 = arith.cmpi eq, %2, %6 : vector<8x256xi32>
    %c-1_i32 = arith.constant -1 : i32
    %8 = vector.broadcast %c-1_i32 : i32 to vector<8x1xi32>
    %9 = arith.cmpi ne, %1, %8 : vector<8x1xi32>
    %10 = vector.broadcast %9 : vector<8x1xi1> to vector<8x256xi1>
    %11 = arith.andi %7, %10 : vector<8x256xi1>
    %cst = arith.constant 6.400000e+01 : f32
    %12 = vector.broadcast %cst : f32 to vector<8x256xf32>
    %13 = arith.mulf %0, %12 : vector<8x256xf32>
    %14 = arith.mulf %0, %0 : vector<8x256xf32>
    %cst_3 = arith.constant 1.000000e+00 : f32
    %15 = vector.broadcast %cst_3 : f32 to vector<8x256xf32>
    %16 = arith.subf %15, %14 : vector<8x256xf32>
    %17 = math.sqrt %16 : vector<8x256xf32>
    %cst_4 = arith.constant 56.1652832 : f32
    %18 = vector.broadcast %cst_4 : f32 to vector<8x256xf32>
    %19 = arith.mulf %0, %18 : vector<8x256xf32>
    %cst_5 = arith.constant 30.6832352 : f32
    %20 = vector.broadcast %cst_5 : f32 to vector<8x256xf32>
    %21 = arith.mulf %17, %20 : vector<8x256xf32>
    %22 = arith.subf %19, %21 : vector<8x256xf32>
    %cst_6 = arith.constant -0.87758255 : f32
    %23 = vector.broadcast %cst_6 : f32 to vector<8x256xf32>
    %24 = arith.cmpf ogt, %0, %23 : vector<8x256xf32>
    %cst_7 = arith.constant 15.3416176 : f32
    %25 = vector.broadcast %cst_7 : f32 to vector<8x256xf32>
    %26 = arith.subf %13, %25 : vector<8x256xf32>
    %27 = arith.select %24, %22, %26 : vector<8x256xi1>, vector<8x256xf32>
    %28 = arith.select %11, %27, %13 : vector<8x256xi1>, vector<8x256xf32>
    %c0_8 = arith.constant 0 : index
    %c0_9 = arith.constant 0 : index
    %29 = vector.load %arg4[%c0_8, %c0_9] : memref<8x256xf32, #tpu.memory_space<vmem>>, vector<8x256xf32>
    tpu.vector_store %arg4[%c0_8, %c0_9], %28 {strides = array<i32>} : memref<8x256xf32, #tpu.memory_space<vmem>>, vector<8x256xf32>,
    return
  }
  func.func @transform_0(%arg0: i32, %arg1: i32) -> (i32, i32) {
    %c0_i32 = arith.constant 0 : i32
    %c0_i32_0 = arith.constant 0 : i32
    return %arg0, %c0_i32 : i32, i32
  }
  func.func @transform_1(%arg0: i32, %arg1: i32) -> (i32, i32) {
    %c0_i32 = arith.constant 0 : i32
    return %arg0, %arg1 : i32, i32
  }
  func.func @transform_2(%arg0: i32, %arg1: i32) -> (i32, i32) {
    %c0_i32 = arith.constant 0 : i32
    return %arg0, %arg1 : i32, i32
  }
}

</mosaic_0001>

<bundles_post_ra>
// kernel: tpu_custom_call.1
= control target key start
LH: loop header
LB: loop body
LE: loop exit
PB: predicated region body
PF: predicated region fallthrough
CT: control target
= control target key end

     0   :  { %7 = vsyncpa [#allocation3], 0  ;;  %s729_s0 = inlined_call_operand.vmem [shape: s32[16,1], index: 0, kind: input, shape index: {}]   ;;  %s730_s1 = inlined_call_operand.hbm [shape: f32[16,256], index: 1, kind: input, shape index: {}, may-alias: {1,2}]   ;;  %s731_s2 = inlined_call_operand.hbm [shape: f32[16,256], index: 2, kind: output, shape index: {}, may-alias: {1,2}]  }
   0x1   :  { %9 = vsyncpa [#allocation3 + $0x1], 0 }
   0x2   :  { %10 = vsyncpa [#allocation4], 0 }
   0x3   :  { %12 = vsyncpa [#allocation4 + $0x1], 0  ;;  %s600_s9 = smov 0   ;;  %s602_s10 = smov 0  }
   0x4   :  { %s604_s11 = smov 0   ;;  %s606_s12 = smov 0  }
   0x5   :  { %s608_s13 = smov 0   ;;  %s610_s14 = smov 0  }
   0x6 LB: > { %s382_s15 = sadd.s32 4294967295, %s582_s14   ;;  %s383_s16 = sadd.s32 4294967294, %s582_s14   ;;  %s582_s14 = sphi %s610_s14, %s18_s14   ;;  %s578_s13 = sphi %s608_s13, %s740_s13   ;;  %s574_s12 = sphi %s606_s12, %s739_s12   ;;  %s570_s11 = sphi %s604_s11, %s738_s11   ;;  %s566_s10 = sphi %s602_s10, %s737_s10   ;;  %s562_s9 = sphi %s600_s9, %s736_s9  }
   0x7   : > { %s30_s17 = sadd.s32 1, %s578_s13  ;;  %s65_s18 = sadd.s32 1, %s570_s11 }
   0x8   : > { %p32_p0 = scmp.ge.s32.totalorder %s30_s17, 2  ;;  %p72_p1 = scmp.ne.s32.totalorder %s570_s11, %s566_s10 }
   0x9   : > { %p73_p2 = scmp.eq.s32.totalorder %s582_s14, 0  ;;  %p78_p3 = scmp.ne.s32.totalorder %s566_s10, %s562_s9 }
   0xa   : > { %s742_s17 = smov (%p32_p0, %s30_s17), 0  ;;  %p79_p5 = scmp.eq.s32.totalorder %s382_s15, 0 }
   0xb   : > { %p641_p4 = por %p73_p2, %p72_p1  ;;  %s60_s20 = ssub.s32 %s578_s13, %s742_s17 }
   0xc   : > { %p104_p6 = scmp.eq.s32.totalorder %s382_s15, 1  ;;  %p63_p7 = scmp.eq.s32.totalorder %s60_s20, 0 }
   0xd   : > { %p647_p8 = por %p79_p5, %p78_p3  ;;  %p110_p10 = scmp.eq.s32.totalorder %s383_s16, 1 }
   0xe   : > { %p651_p9 = por %p104_p6, %p72_p1  ;;  %p385_p12 = scmp.ge.s32.totalorder %s582_s14, 2 }
   0xf   : > { %s656_s23 = scalar_select %p63_p7, %s570_s11, %s65_s18  }
  0x10   : > { %p658_p11 = por %p110_p10, %p78_p3  ;;  %p414_p13 = scmp.lt.s32.totalorder %s582_s14, 2 }
  0x11   : > { %s137_s25 = sand.u32 1, %s570_s11   ;;  %s400_s27 = sshll.u32 %s578_s13, 4 }
  0x12   : > { %s386_s26 = sshll.u32 %s137_s25, 4  ;;  %s148_s30 = scalar_lea.hbm %s730_s1, %s400_s27 }
  0x13   : > { %s141_s3 = scalar_lea.vmem [#allocation2], %s386_s26  ;;  %s150_s5 = sshll.u32 %s148_s30, 4  ;;  %s151_s5 = int_to_ptr.hbm [resolvable:$true] %s150_s5 }
  0x14   : > { %s152_s4 = sshll.u32 %s141_s3, 4  ;;  %p407_p0 = pnand %p414_p13, %p641_p4  ;;  %s153_s4 = int_to_ptr.vmem [resolvable:$true] %s152_s4 }
  0x15   : > { %p389_p1 = scmp.ge.s32.totalorder %s582_s14, 1  ;;  %p157_p2 = scmp.lt.s32.totalorder %s582_s14, 3 }
  0x16   : > { %s138_s6 = scalar_lea.sflag [#allocation3], %s137_s25 }
  0x17   : > { %409 = dma.hbm_to_vmem [thread:$0]  (!%p407_p0), %s151_s5, 256, %s153_s4, %s138_s6  }
  0x18   : > { %p158_p3 = pnand %p389_p1, %p157_p2 }
  0x19   : > { %s674_s7 = sand.u32 (!%p158_p3), 1, %s566_s10  }
  0x1a   : > { %161 = sbr.rel (%p158_p3) target bundleno = 169 (0xa9), region = 28  ;;  %s390_s8 = sshll.u32 (!%p158_p3), %s674_s7, 4 }
  0x1b   : > { %s164_s15 = scalar_lea.sflag (!%p158_p3), [#allocation3], %s674_s7  ;;  %s167_s16 = scalar_lea.vmem (!%p158_p3), [#allocation2], %s390_s8 }
  0x1f   : > { %553 = dma.done.wait (%p647_p8), %s164_s15, 256  }
  0x20   : > { %555 = vsyncadd (%p647_p8), %s164_s15, 4294967040  ;;  %p193_p4 = scmp.lt.s32.totalorder %s574_s12, 1  ;;  %v584_v0 = vmov 0   ;;  %v199_v3 = vld [vmem:[%s167_s16] sm:$0xff]  ;;  %v200_v4 = vld [vmem:[%s167_s16 + $0x8] sm:$0xff]  ;;  %v202_v28 = vlaneseq  ;;  %s401_s21 = sshll.u32 %s574_s12, 4 }
  0x21   : > { %465 = vset.pattern.permute.xlu0 %v584_v0  ;;  %v223_v5 = vmul.f32 %v199_v3, %v199_v3  ;;  %v224_v6 = vmul.f32 %v200_v4, %v200_v4  ;;  %v221_v31 = vmul.f32 64.0, %v199_v3  ;;  %v251_v32 = vmul.f32 56.165283, %v199_v3  ;;  %s281_s29 = scalar_lea.hbm %s731_s2, %s401_s21  ;;  %s192_s30 = scalar_lea.vmem [#allocation5], %s390_s8 }
  0x22   : > { %s194_s18 = scalar_select %p193_p4, %s574_s12, 1  ;;  %v222_v34 = vmul.f32 64.0, %v200_v4  ;;  %v252_v35 = vmul.f32 56.165283, %v200_v4  ;;  %v203_v37 = vand.u32 127, %v202_v28 }
  0x23   : > { %v225_v7 = vsub.f32 1.0, %v223_v5  ;;  %v226_v8 = vsub.f32 1.0, %v224_v6  ;;  %v393_v39 = vadd.f32 -15.341618, %v221_v31  ;;  %vm257_vm5 = vcmp.gt.f32.partialorder %v199_v3, -0.87758255 }
  0x24   : > { %s392_s19 = sshll.u32 %s194_s18, 3  ;;  %v394_v41 = vadd.f32 -15.341618, %v222_v34  ;;  %v204_v42 = vadd.s32 128, %v203_v37  ;;  %vm258_vm6 = vcmp.gt.f32.partialorder %v200_v4, -0.87758255 }
  0x25   : > { %s196_s26 = scalar_lea.vmem %s729_s0, %s392_s19  ;;  %466 = vrsqrt.f32 %v225_v7  ;;  %vm234_vm1 = vcmp.eq.f32.partialorder %v225_v7, inf  ;;  %vm246_vm2 = vcmp.eq.f32.partialorder %v226_v8, inf  ;;  %v237_v23 = vand.u32 2147483648, %v225_v7  ;;  %s283_s3 = sshll.u32 %s192_s30, 4  ;;  %s284_s3 = int_to_ptr.vmem [resolvable:$true] %s283_s3 }
  0x26   : > { %v201_v1 = vld [vmem:[%s196_s26] sm:$0xff]  ;;  %468 = vrsqrt.f32 %v226_v8  ;;  %vm236_vm3 = vcmp.eq.f32.partialorder %v225_v7, 0.0  ;;  %v249_v25 = vand.u32 2147483648, %v226_v8  ;;  %vm248_vm4 = vcmp.eq.f32.partialorder %v226_v8, 0.0  ;;  %s285_s4 = sshll.u32 %s281_s29, 4  ;;  %s268_s12 = scalar_lea.sflag [#allocation4], %s674_s7  ;;  %s286_s4 = int_to_ptr.hbm [resolvable:$true] %s285_s4 }
  0x27   : > { %209 = vperm.xlu0 %465, %v201_v1   ;;  %vm213_vm0 = vcmp.ne.s32.totalorder %v201_v1, 4294967295  ;;  %s514_s5 = sshra.s32 %s286_s4, 4  ;;  %s520_s16 = scalar_lea.hbm %s731_s2, 32  ;;  %s515_s5 = int_to_ptr.hbm [resolvable:$true] %s514_s5 }
  0x28   : > { %v214_v2 = vsel %vm213_vm0, 1, %v584_v0  ;;  %s516_s6 = scalar_lea.hbm %s515_s5, 16  ;;  %p521_p8 = scmp.lt.s32.totalorder %s515_s5, %s731_s2 }
  0x29   : > { %p517_p5 = scmp.ne.s32.totalorder %s515_s5, %s516_s6  ;;  %p522_p10 = scmp.lt.s32.totalorder %s520_s16, %s516_s6 }
  0x2b   : > { %v467_v9 = vpop.eup %466  ;;  %p518_p6 = pnand %p517_p5, %p651_p9  ;;  %p523_p13 = por %p522_p10, %p521_p8 }
  0x2c   : > { %v469_v10 = vpop.eup %468  ;;  %v228_v11 = vmul.f32 %v467_v9, %v225_v7 }
  0x2d   : > { %v240_v12 = vmul.f32 %v469_v10, %v226_v8  ;;  %p519_p7 = pneg %p518_p6 }
  0x2e   : > { %v229_v13 = vmul.f32 %v467_v9, %v228_v11 }
  0x2f   : > { %216 = vperm.xlu0 %465, %v214_v2   ;;  %v241_v14 = vmul.f32 %v469_v10, %v240_v12  ;;  %p524_p0 = pnand %p523_p13, %p519_p7 }
  0x30   : > { %v230_v15 = vmul.f32 0.5, %v229_v13 }
  0x31   : > { %v242_v16 = vmul.f32 0.5, %v241_v14 }
  0x32   : > { %v231_v17 = vsub.f32 1.5, %v230_v15 }
  0x33   : > { %v243_v18 = vsub.f32 1.5, %v242_v16 }
  0x34   : > { %v232_v19 = vmul.f32 %v467_v9, %v231_v17 }
  0x35   : > { %v244_v20 = vmul.f32 %v469_v10, %v243_v18 }
  0x36   : > { %v233_v21 = vmul.f32 %v232_v19, %v225_v7 }
  0x37   : > { %v245_v22 = vmul.f32 %v244_v20, %v226_v8 }
  0x38   : > { %v235_v24 = vsel %vm234_vm1, %v225_v7, %v233_v21 }
  0x39   : > { %v247_v26 = vsel %vm246_vm2, %v226_v8, %v245_v22  ;;  %v238_v27 = vsel %vm236_vm3, %v237_v23, %v235_v24 }
  0x3a   : > { %v250_v29 = vsel %vm248_vm4, %v249_v25, %v247_v26  ;;  %v253_v33 = vmul.f32 30.683235, %v238_v27 }
  0x3b   : > { %v254_v36 = vmul.f32 30.683235, %v250_v29 }
  0x3c   : > { %v255_v38 = vsub.f32 %v251_v32, %v253_v33 }
  0x3d   : > { %v256_v40 = vsub.f32 %v252_v35, %v254_v36 }
  0x3e   : > { %v261_v44 = vsel %vm257_vm5, %v255_v38, %v393_v39 }
  0x3f   : > { %v262_v45 = vsel %vm258_vm6, %v256_v40, %v394_v41 }
  0x99   : > { %v210_v30 = vpop.permute.xlu0 %209 }
  0x9a   : > { %vm211_vm7 = vcmp.eq.s32.totalorder %v203_v37, %v210_v30  ;;  %vm212_vm9 = vcmp.eq.s32.totalorder %v204_v42, %v210_v30 }
  0xa1   : > { %v217_v43 = vpop.permute.xlu0 %216 }
  0xa2   : > { %vm218_vm8 = vcmp.eq.s32.totalorder %v217_v43, 1 }
  0xa3   : > { %vm219_vm10 = vmand %vm211_vm7, %vm218_vm8 }
  0xa4   : > { %vm220_vm11 = vmand %vm212_vm9, %vm218_vm8  ;;  %v263_v46 = vsel %vm219_vm10, %v261_v44, %v221_v31 }
  0xa5   : > { %v264_v47 = vsel %vm220_vm11, %v262_v45, %v222_v34  ;;  %265 = vst [vmem:[%s192_s30] sm:$0xff] %v263_v46 }
  0xa6   : > { %266 = vst [vmem:[%s192_s30 + $0x8] sm:$0xff] %v264_v47 }
  0xa7   : > { %527 = shalt.err (!%p524_p0)
}
  0xa8   : > { %404 = dma.vmem_to_hbm [thread:$0]  (%p651_p9), %s284_s3, 256, %s286_s4, %s268_s12  }
  0xa9 PF: > { %s297_s7 = sand.u32 1, %s562_s9   ;;  %p411_p1 = pnand %p385_p12, %p658_p11 }
  0xaa   : > { %s298_s20 = scalar_lea.sflag [#allocation4], %s297_s7 }
  0xab   : > { %p412_p2 = pneg %p411_p1 }
  0xad   : > { %557 = dma.done.wait (%p412_p2), %s298_s20, 256  }
  0xae   : > { %559 = vsyncadd (%p412_p2), %s298_s20, 4294967040  ;;  %s18_s14 = sadd.s32 1, %s582_s14   ;;  %s736_s9 = smov %s566_s10 }
  0xaf   : > { %p15_p3 = scmp.ge.s32.totalorder %s18_s14, 4   ;;  %s737_s10 = smov %s570_s11 }
  0xb0   : > { %s738_s11 = smov %s656_s23  ;;  %s739_s12 = smov %s578_s13 }
  0xb1   : > { %s740_s13 = smov %s742_s17  ;;  %17 = sbr.rel (!%p15_p3) target bundleno = 6 (0x6), region = 76 }
  0xb6   :  { %304 = vsyncpa [#allocation3], 1 }
  0xb7   :  { %306 = vsyncpa [#allocation3 + $0x1], 1 }
  0xb8   :  { %307 = vsyncpa [#allocation4], 1 }
  0xb9   :  { %309 = vsyncpa [#allocation4 + $0x1], 1 }

</bundles_post_ra>
